<compile_context>
chip_gen: v7x
topology: tpu7x:2x2x1
jax: 0.10.0
libtpu: 0.0.40
codegen_flags: <defaults>
</compile_context>

<pallas_src>
import jax
import jax.numpy as jnp
from jax.experimental import pallas as pl
from jax.experimental.pallas import tpu as pltpu


def _round_up(x, m):
    return ((x + m - 1) // m) * m


def _self_attn_kernel(x_ref, w1_ref, b1_ref, w2_ref, b2_ref, out_ref, wts_ref):
    # x_ref:   (nb, T, H)  VMEM
    # w1_ref:  (H, F)      VMEM
    # b1_ref:  (1, F)      VMEM
    # w2_ref:  (1, F)      VMEM  (Linear(F,1) weight, pre-transposed to a row)
    # b2_ref:  (1,)        SMEM  (scalar)
    # out_ref: (nb, T, H)  VMEM
    # wts_ref: (nb, 1, T)  VMEM  (lane-dense softmax weights)
    nb, T, H = x_ref.shape
    F = w1_ref.shape[1]

    x = x_ref[...]                                          # (nb, T, H)
    x2d = x.reshape(nb * T, H)                              # layout-preserving (T % 8 == 0 or nb == 1)

    # Linear(H, F) -> ReLU: one MXU matmul with M = nb*T rows.
    h = jnp.dot(x2d, w1_ref[...], preferred_element_type=jnp.float32)
    h = jnp.maximum(h + b1_ref[...], 0.0)                   # (nb*T, F)

    # Linear(F, 1): VPU multiply against the weight row + lane reduction
    # (avoids an N=1 MXU matmul).
    es = (h * w2_ref[...]).reshape(nb, T, F)                # (nb, T, F)
    e = jnp.sum(es, axis=-1, keepdims=True) + b2_ref[0]     # (nb, T, 1)

    # Softmax over the sequence axis (per batch row).  Exact division: the
    # kernel is HBM-bound and the EUP is idle, so approx reciprocal buys nothing.
    m = jnp.max(e, axis=1, keepdims=True)                   # (nb, 1, 1)
    p = jnp.exp(e - m)                                      # (nb, T, 1)
    s = jnp.sum(p, axis=1, keepdims=True)                   # (nb, 1, 1)
    w = p / s                                               # (nb, T, 1)

    # outputs = encoder_outputs * weights.unsqueeze(-1)
    out_ref[...] = (x * w).astype(out_ref.dtype)            # (nb, T, H)

    # Lane-dense weights store: relayout the tiny (nb, T) column onto lanes via
    # a lane reduction (traffic is negligible next to the (nb, T, H) slab, and
    # the store becomes unmasked/lane-dense instead of a 128x-padded column).
    w_lane = jnp.sum(w, axis=-1)                            # (nb, T), T on lanes
    wts_ref[...] = w_lane[:, None, :].astype(wts_ref.dtype)  # (nb, 1, T)


def _vmem_capacity_bytes():
    try:
        return int(pltpu.get_tpu_info().vmem_capacity_bytes)
    except Exception:
        return 64 << 20  # conservative fallback: smallest per-core VMEM (v7x)


def _step_vmem_bytes(nb, T, H, F, itemsize):
    """Conservative per-grid-step VMEM footprint.

    Counts double-buffered x input, double-buffered (nb, T, H) output,
    double-buffered lane-dense weights output, the f32 hidden activations
    (h, h*w2 and relayout slack) and the (double-buffered) parameters.
    """
    x_slab = nb * T * H * itemsize
    wts_slab = nb * _round_up(T, 128) * itemsize            # (nb, 1, T) lane-padded
    hidden = 3 * nb * T * F * 4                              # h, es, slack (f32)
    params = 2 * (H * F + 2 * F) * 4
    return 2 * x_slab + 2 * x_slab + 2 * wts_slab + hidden + params


def _choose_batch_tile(B, T, H, F, itemsize, target_bytes):
    """Batch rows per grid step.

    Largest divisor of B whose corrected footprint fits the budget, preferring
    >= 4 (else >= 2) grid steps when the per-step x slab stays >= ~1 MiB
    (HBM-roofline sweet spot; keeps both v7x TensorCores fed with pipelined
    work).  nb=1 fallback if T is not sublane-aligned (keeps the batch-merging
    reshape layout-preserving).
    """
    if T % 8 != 0:
        return 1
    divs = [d for d in range(1, B + 1)
            if B % d == 0 and _step_vmem_bytes(d, T, H, F, itemsize) <= target_bytes]
    if not divs:
        return 1
    nb = max(divs)
    for min_steps in (4, 2):
        if B // nb >= min_steps:
            break
        cands = [d for d in divs
                 if B // d >= min_steps and d * T * H * itemsize >= (1 << 20)]
        if cands:
            return max(cands)
    return nb


def self_attention(x, w1, b1, w2, b2):
    """SelfAttention forward.  x: (B, T, H) f32 -> (outputs (B, T, H), weights (B, T))."""
    B, T, H = x.shape
    F = w1.shape[1]                       # 64
    itemsize = x.dtype.itemsize

    vmem_cap = _vmem_capacity_bytes()
    # Target the resident footprint at ~40% of physical VMEM: bigger slabs on
    # the 128 MiB single-TC chips (v5e/v6e), smaller on v7x (64 MiB, 2 TCs).
    target_bytes = min(int(0.40 * vmem_cap), 48 << 20)
    nb = _choose_batch_tile(B, T, H, F, itemsize, target_bytes)
    grid_b = B // nb

    footprint = _step_vmem_bytes(nb, T, H, F, itemsize)
    vmem_limit = int(min(max(2 * footprint, 32 << 20), int(0.9 * vmem_cap)))

    b1_2d = b1.reshape(1, F)
    w2_row = w2.reshape(1, F)             # (F, 1) -> (1, F) row for the VPU path
    b2_s = b2.reshape(1)                  # SMEM scalar

    out, wts3 = pl.pallas_call(
        _self_attn_kernel,
        out_shape=(
            jax.ShapeDtypeStruct((B, T, H), x.dtype),
            jax.ShapeDtypeStruct((B, 1, T), x.dtype),       # lane-dense weights
        ),
        grid_spec=pltpu.PrefetchScalarGridSpec(
            num_scalar_prefetch=0,
            grid=(grid_b,),
            in_specs=[
                pl.BlockSpec((nb, T, H), lambda b: (b, 0, 0)),        # x
                pl.BlockSpec((H, F), lambda b: (0, 0)),               # w1
                pl.BlockSpec((1, F), lambda b: (0, 0)),               # b1
                pl.BlockSpec((1, F), lambda b: (0, 0)),               # w2 (row)
                pl.BlockSpec(memory_space=pltpu.MemorySpace.SMEM),    # b2 scalar
            ],
            out_specs=[
                pl.BlockSpec((nb, T, H), lambda b: (b, 0, 0)),        # outputs
                pl.BlockSpec((nb, 1, T), lambda b: (b, 0, 0)),        # weights
            ],
        ),
        compiler_params=pltpu.CompilerParams(
            dimension_semantics=("parallel",),
            vmem_limit_bytes=vmem_limit,
        ),
    )(x, w1, b1_2d, w2_row, b2_s)

    weights = wts3[:, 0, :]               # (B, T)
    return out, weights


def _reference(x, w1, b1, w2, b2):
    h = jnp.maximum(x @ w1 + b1, 0.0)
    e = (h @ w2 + b2)[..., 0]             # (B, T)
    w = jax.nn.softmax(e, axis=1)
    return x * w[..., None], w


def _check(B, T, H, key):
    kx, k1, k2, k3, k4 = jax.random.split(key, 5)
    x = jax.random.normal(kx, (B, T, H), dtype=jnp.float32)
    lim1 = 1.0 / (H ** 0.5)
    w1 = jax.random.uniform(k1, (H, 64), jnp.float32, -lim1, lim1)
    b1 = jax.random.uniform(k2, (64,), jnp.float32, -lim1, lim1)
    lim2 = 1.0 / (64 ** 0.5)
    w2 = jax.random.uniform(k3, (64, 1), jnp.float32, -lim2, lim2)
    b2 = jax.random.uniform(k4, (1,), jnp.float32, -lim2, lim2)

    out, wts = self_attention(x, w1, b1, w2, b2)
    out, wts = jax.block_until_ready((out, wts))

    ref_out, ref_wts = _reference(x, w1, b1, w2, b2)
    assert out.shape == (B, T, H) and wts.shape == (B, T)
    assert jnp.allclose(out, ref_out, atol=5e-3, rtol=5e-3)
    assert jnp.allclose(wts, ref_wts, atol=5e-3, rtol=5e-3)


if __name__ == "__main__":
    key = jax.random.PRNGKey(0)
    k_small, k_big = jax.random.split(key, 2)

    # Small shape consistent with the module (batch=2, seq=8, hidden=32).
    _check(B=2, T=8, H=32, key=k_small)
    # Larger shape exercising multi-batch blocks per grid step.
    _check(B=8, T=64, H=128, key=k_big)

    print("KERNEL_OK")
</pallas_src>

<mosaic_0001>
module attributes {stable_mosaic.version = 11 : i64} {
  func.func @_self_attn_kernel(%arg0: i32, %arg1: memref<2x8x32xf32, #tpu.memory_space<vmem>>, %arg2: memref<32x64xf32, #tpu.memory_space<vmem>>, %arg3: memref<1x64xf32, #tpu.memory_space<vmem>>, %arg4: memref<1x64xf32, #tpu.memory_space<vmem>>, %arg5: memref<1xf32, #tpu.memory_space<smem>>, %arg6: memref<2x8x32xf32, #tpu.memory_space<vmem>>, %arg7: memref<2x1x8xf32, #tpu.memory_space<vmem>>) attributes {dimension_semantics = [#tpu.dimension_semantics<parallel>], iteration_bounds = array<i64: 1>, scalar_prefetch = 0 : i64, scratch_operands = 0 : i64, tpu.core_type = #tpu.core_type<tc>, window_params = [{transform_indices = @transform_0, window_bounds = array<i64: 2, 8, 32>}, {pipeline_mode = #tpu.pipeline_mode<synchronous>, transform_indices = @transform_1, window_bounds = array<i64: 32, 64>}, {pipeline_mode = #tpu.pipeline_mode<synchronous>, transform_indices = @transform_2, window_bounds = array<i64: 1, 64>}, {pipeline_mode = #tpu.pipeline_mode<synchronous>, transform_indices = @transform_3, window_bounds = array<i64: 1, 64>}, {transform_indices = @transform_4, window_bounds = array<i64: 1>}, {transform_indices = @transform_5, window_bounds = array<i64: 2, 8, 32>}, {transform_indices = @transform_6, window_bounds = array<i64: 2, 1, 8>}]} {
    %c0 = arith.constant 0 : index
    %c0_0 = arith.constant 0 : index
    %c0_1 = arith.constant 0 : index
    %0 = vector.load %arg1[%c0, %c0_0, %c0_1] : memref<2x8x32xf32, #tpu.memory_space<vmem>>, vector<2x8x32xf32>
    %1 = vector.shape_cast %0 : vector<2x8x32xf32> to vector<16x32xf32>
    %c0_2 = arith.constant 0 : index
    %c0_3 = arith.constant 0 : index
    %2 = vector.load %arg2[%c0_2, %c0_3] : memref<32x64xf32, #tpu.memory_space<vmem>>, vector<32x64xf32>
    %cst = arith.constant dense<0.000000e+00> : vector<16x64xf32>
    %3 = tpu.matmul %1, %2, %cst {dimension_numbers = #tpu.dot_dimension_numbers<[1], [0], [0], [1], [0, 0, 1, 1], [], []>} : vector<16x32xf32>, vector<32x64xf32>, vector<16x64xf32> -> vector<16x64xf32>
    %c0_4 = arith.constant 0 : index
    %c0_5 = arith.constant 0 : index
    %4 = vector.load %arg3[%c0_4, %c0_5] : memref<1x64xf32, #tpu.memory_space<vmem>>, vector<1x64xf32>
    %5 = vector.broadcast %4 : vector<1x64xf32> to vector<16x64xf32>
    %6 = arith.addf %3, %5 : vector<16x64xf32>
    %cst_6 = arith.constant 0.000000e+00 : f32
    %7 = vector.broadcast %cst_6 : f32 to vector<16x64xf32>
    %8 = arith.maximumf %6, %7 : vector<16x64xf32>
    %c0_7 = arith.constant 0 : index
    %c0_8 = arith.constant 0 : index
    %9 = vector.load %arg4[%c0_7, %c0_8] : memref<1x64xf32, #tpu.memory_space<vmem>>, vector<1x64xf32>
    %10 = vector.broadcast %9 : vector<1x64xf32> to vector<16x64xf32>
    %11 = arith.mulf %8, %10 : vector<16x64xf32>
    %12 = vector.shape_cast %11 : vector<16x64xf32> to vector<2x8x64xf32>
    %cst_9 = arith.constant dense<0.000000e+00> : vector<2x8xf32>
    %13 = vector.multi_reduction <add>, %12, %cst_9 [2] : vector<2x8x64xf32> to vector<2x8xf32>
    %14 = vector.shape_cast %13 : vector<2x8xf32> to vector<2x8x1xf32>
    %c0_10 = arith.constant 0 : index
    %15 = memref.load %arg5[%c0_10] : memref<1xf32, #tpu.memory_space<smem>>
    %16 = vector.broadcast %15 : f32 to vector<2x8x1xf32>
    %17 = arith.addf %14, %16 : vector<2x8x1xf32>
    %cst_11 = arith.constant dense<0xFF800000> : vector<2x1xf32>
    %18 = vector.multi_reduction <maximumf>, %17, %cst_11 [1] : vector<2x8x1xf32> to vector<2x1xf32>
    %19 = vector.shape_cast %18 : vector<2x1xf32> to vector<2x1x1xf32>
    %20 = vector.broadcast %19 : vector<2x1x1xf32> to vector<2x8x1xf32>
    %21 = arith.subf %17, %20 : vector<2x8x1xf32>
    %22 = math.exp %21 : vector<2x8x1xf32>
    %cst_12 = arith.constant dense<0.000000e+00> : vector<2x1xf32>
    %23 = vector.multi_reduction <add>, %22, %cst_12 [1] : vector<2x8x1xf32> to vector<2x1xf32>
    %24 = vector.shape_cast %23 : vector<2x1xf32> to vector<2x1x1xf32>
    %25 = vector.broadcast %24 : vector<2x1x1xf32> to vector<2x8x1xf32>
    %26 = arith.divf %22, %25 : vector<2x8x1xf32>
    %27 = vector.broadcast %26 : vector<2x8x1xf32> to vector<2x8x32xf32>
    %28 = arith.mulf %0, %27 : vector<2x8x32xf32>
    %c0_13 = arith.constant 0 : index
    %c0_14 = arith.constant 0 : index
    %c0_15 = arith.constant 0 : index
    %29 = vector.load %arg6[%c0_13, %c0_14, %c0_15] : memref<2x8x32xf32, #tpu.memory_space<vmem>>, vector<2x8x32xf32>
    tpu.vector_store %arg6[%c0_13, %c0_14, %c0_15], %28 {strides = array<i32>} : memref<2x8x32xf32, #tpu.memory_space<vmem>>, vector<2x8x32xf32>,
    %cst_16 = arith.constant dense<0.000000e+00> : vector<2x8xf32>
    %30 = vector.multi_reduction <add>, %26, %cst_16 [2] : vector<2x8x1xf32> to vector<2x8xf32>
    %31 = vector.shape_cast %30 : vector<2x8xf32> to vector<2x1x8xf32>
    %c0_17 = arith.constant 0 : index
    %c0_18 = arith.constant 0 : index
    %c0_19 = arith.constant 0 : index
    %32 = vector.load %arg7[%c0_17, %c0_18, %c0_19] : memref<2x1x8xf32, #tpu.memory_space<vmem>>, vector<2x1x8xf32>
    tpu.vector_store %arg7[%c0_17, %c0_18, %c0_19], %31 {strides = array<i32>} : memref<2x1x8xf32, #tpu.memory_space<vmem>>, vector<2x1x8xf32>,
    return
  }
  func.func @transform_0(%arg0: i32) -> (i32, i32, i32) {
    %c0_i32 = arith.constant 0 : i32
    %c0_i32_0 = arith.constant 0 : i32
    %c0_i32_1 = arith.constant 0 : i32
    return %arg0, %c0_i32, %c0_i32_0 : i32, i32, i32
  }
  func.func @transform_1(%arg0: i32) -> (i32, i32) {
    %c0_i32 = arith.constant 0 : i32
    %c0_i32_0 = arith.constant 0 : i32
    %c0_i32_1 = arith.constant 0 : i32
    return %c0_i32, %c0_i32_0 : i32, i32
  }
  func.func @transform_2(%arg0: i32) -> (i32, i32) {
    %c0_i32 = arith.constant 0 : i32
    %c0_i32_0 = arith.constant 0 : i32
    %c0_i32_1 = arith.constant 0 : i32
    return %c0_i32, %c0_i32_0 : i32, i32
  }
  func.func @transform_3(%arg0: i32) -> (i32, i32) {
    %c0_i32 = arith.constant 0 : i32
    %c0_i32_0 = arith.constant 0 : i32
    %c0_i32_1 = arith.constant 0 : i32
    return %c0_i32, %c0_i32_0 : i32, i32
  }
  func.func @transform_4(%arg0: i32) -> i32 {
    %c0_i32 = arith.constant 0 : i32
    %c0_i32_0 = arith.constant 0 : i32
    return %c0_i32 : i32
  }
  func.func @transform_5(%arg0: i32) -> (i32, i32, i32) {
    %c0_i32 = arith.constant 0 : i32
    %c0_i32_0 = arith.constant 0 : i32
    %c0_i32_1 = arith.constant 0 : i32
    return %arg0, %c0_i32, %c0_i32_0 : i32, i32, i32
  }
  func.func @transform_6(%arg0: i32) -> (i32, i32, i32) {
    %c0_i32 = arith.constant 0 : i32
    %c0_i32_0 = arith.constant 0 : i32
    %c0_i32_1 = arith.constant 0 : i32
    return %arg0, %c0_i32, %c0_i32_0 : i32, i32, i32
  }
}

</mosaic_0001>

<bundles_post_ra>
// kernel: tpu_custom_call.1
= control target key start
LH: loop header
LB: loop body
LE: loop exit
PB: predicated region body
PF: predicated region fallthrough
CT: control target
= control target key end

     0   :  { %13 = vsyncpa [#allocation4], 0  ;;  %s532_s0 = inlined_call_operand.hbm [shape: f32[2,8,32], index: 0, kind: input, shape index: {}]   ;;  %s533_s1 = inlined_call_operand.hbm [shape: f32[32,64], index: 1, kind: input, shape index: {}]   ;;  %s534_s2 = inlined_call_operand.vmem [shape: f32[1,64], index: 2, kind: input, shape index: {}]   ;;  %s535_s3 = inlined_call_operand.vmem [shape: f32[1,64], index: 3, kind: input, shape index: {}]   ;;  %s536_s4 = inlined_call_operand.<no memory space> [shape: f32[1], index: 4, kind: input, shape index: {}]   ;;  %s537_s5 = inlined_call_operand.hbm [shape: f32[2,8,32], index: 5, kind: output, shape index: {0}]   ;;  %s538_s6 = inlined_call_operand.hbm [shape: f32[2,1,8], index: 6, kind: output, shape index: {1}]  }
   0x1   :  { %14 = vsyncpa [#allocation7], 0 }
   0x2   :  { %15 = vsyncpa [#allocation5], 0 }
   0x3   :  { %16 = vsyncpa [#allocation10], 0  ;;  %s402_s21 = smov [#allocation3]   ;;  %s306_s25 = scalar_lea.hbm %s532_s0, 256 }
   0x4   :  { %s22_s22 = sshll.u32 %s402_s21, 4  ;;  %p307_p0 = scmp.ne.s32.totalorder %s532_s0, %s306_s25  ;;  %s23_s22 = int_to_ptr.vmem [resolvable:$true] %s22_s22 }
   0x5   :  { %p310_p1 = scmp.lt.u32.totalorder %s306_s25, %s532_s0 }
   0x7   :  { %p312_p2 = pnand %p310_p1, %p307_p0 }
   0x9   :  { %315 = shalt.err (!%p312_p2)
}
   0xa   :  { %s316_s30 = scalar_lea.vmem %s23_s22, 256  ;;  %p321_p4 = scmp.lt.s32.totalorder %s23_s22, %s23_s22 }
   0xb   :  { %p317_p3 = scmp.ne.s32.totalorder %s23_s22, %s316_s30  ;;  %p322_p5 = scmp.lt.s32.totalorder %s316_s30, %s316_s30 }
   0xd   :  { %p323_p6 = por %p322_p5, %p321_p4 }
   0xf   :  { %p324_p7 = pnand %p323_p6, %p317_p3 }
  0x11   :  { %327 = shalt.err (!%p324_p7)
}
  0x12   :  { %s403_s7 = smov 128   ;;  %s404_s8 = smov 8  }
  0x13   :  { %28 = dma.hbm_to_vmem [thread:$0]  %s532_s0, 256, %s23_s22, [#allocation4], %s403_s7, %s403_s7, %s404_s8  }
  0x14   :  { %s405_s11 = smov [#allocation6]   ;;  %s328_s15 = scalar_lea.hbm %s533_s1, 512 }
  0x15   :  { %s34_s12 = sshll.u32 %s405_s11, 4  ;;  %p329_p8 = scmp.ne.s32.totalorder %s533_s1, %s328_s15  ;;  %s35_s12 = int_to_ptr.vmem [resolvable:$true] %s34_s12 }
  0x16   :  { %p332_p9 = scmp.lt.u32.totalorder %s328_s15, %s533_s1 }
  0x18   :  { %p334_p10 = pnand %p332_p9, %p329_p8 }
  0x1a   :  { %337 = shalt.err (!%p334_p10)
}
  0x1b   :  { %s338_s20 = scalar_lea.vmem %s35_s12, 512  ;;  %p343_p12 = scmp.lt.s32.totalorder %s35_s12, %s35_s12 }
  0x1c   :  { %p339_p11 = scmp.ne.s32.totalorder %s35_s12, %s338_s20  ;;  %p344_p13 = scmp.lt.s32.totalorder %s338_s20, %s338_s20 }
  0x1e   :  { %p345_p0 = por %p344_p13, %p343_p12 }
  0x20   :  { %p346_p1 = pnand %p345_p0, %p339_p11 }
  0x22   :  { %349 = shalt.err (!%p346_p1)
}
  0x23   :  { %40 = dma.hbm_to_vmem [thread:$0]  %s533_s1, 512, %s35_s12, [#allocation7], %s403_s7, %s403_s7, %s404_s8  }
  0x24   :  { %394 = dma.done.wait [#allocation4], 256  }
  0x25   :  { %395 = vsyncadd [#allocation4], 4294967040 }
  0x26   :  { %396 = dma.done.wait [#allocation7], 512  }
  0x27   :  { %397 = vsyncadd [#allocation7], 4294966784  ;;  %vm66_vm0 = vcmask 261120   ;;  %v55_v0 = vld [vmem:[#allocation6] sm:$0xff]  ;;  %v56_v1 = vld [vmem:[#allocation6 + $0x8] sm:$0xff]  ;;  %vm159_vm1 = vcmask 523264   ;;  %v167_v20 = vstv %s536_s4  ;;  %v212_v54 = vlaneseq }
  0x28   :  { %v57_v2 = vld [vmem:[#allocation6 + $0x10] sm:$0xff]  ;;  %v282_v3 = vpack.c.bf16 %v56_v1, %v55_v0  ;;  %v58_v4 = vld [vmem:[#allocation6 + $0x18] sm:$0xff]  ;;  %vm224_vm2 = vcmask 57344   ;;  %s407_s4 = smov [#allocation9]  }
  0x29   :  { %v475_v5 = vld [vmem:[#allocation3] sm:$0xff]  ;;  %v286_v6 = vpack.c.bf16 %v58_v4, %v57_v2  ;;  %v479_v7 = vld [vmem:[#allocation3 + $0x8] sm:$0xff]  ;;  %v213_v56 = vand.u32 127, %v212_v54  ;;  %v215_v57 = vshrl.u32 %v212_v54, 7  ;;  %s244_s27 = sshll.u32 %s407_s4, 4  ;;  %s496_s27 = int_to_ptr.vmem [resolvable:$true] %s244_s27 }
  0x2a   :  { %279 = vmatprep.mubr.msk.f32.mxu0 %vm66_vm0, %v475_v5  ;;  %283 = vmatprep.subr.bf16.mxu0 %v282_v3  ;;  %v261_v8 = vld [vmem:[%s534_s2] ss:$0 sm:$0xff]  ;;  %s406_s2 = smov [#allocation8]  }
  0x2b   :  { %285 = vmatpush3.bf16.msra.mxu0 %v282_v3  ;;  %v264_v13 = vld [vmem:[%s535_s3] ss:$0 sm:$0xff]  ;;  %v216_v58 = vsub.s32 %v213_v56, %v215_v57  ;;  %s232_s3 = sshll.u32 %s406_s2, 4  ;;  %s233_s3 = int_to_ptr.vmem [resolvable:$true] %s232_s3 }
  0x2c   :  { %287 = vmatprep.subr.bf16.mxu0 %v286_v6  ;;  %s350_s28 = scalar_lea.vmem %s233_s3, 256  ;;  %p355_p3 = scmp.lt.s32.totalorder %s233_s3, %s233_s3 }
  0x2d   :  { %p351_p2 = scmp.ne.s32.totalorder %s233_s3, %s350_s28  ;;  %p356_p4 = scmp.lt.s32.totalorder %s350_s28, %s350_s28 }
  0x2f   :  { %289 = vmatpush3.bf16.msra.mxu0 %v286_v6  ;;  %p357_p5 = por %p356_p4, %p355_p3 }
  0x31   :  { %p358_p6 = pnand %p357_p5, %p351_p2 }
  0x32   :  { %280 = vmatmul.mubr.msk.f32.vlgmr.msra.gmra.mrb[0].mxu0 %vm66_vm0, %v479_v7 }
 0x105   :  { %v281_v9 = vpop.f32.mrb[0].mxu0 }
 0x106   :  { %v145_v10 = vadd.f32 %v281_v9, %v261_v8  ;;  %v139_v11 = vpop.f32.mrb[1].mxu0 }
 0x107   :  { %v140_v12 = vadd.f32 %v261_v8, %v139_v11 }
 0x108   :  { %v149_v14 = vmax.f32 %v145_v10, 0.0 }
 0x109   :  { %v148_v15 = vmax.f32 %v140_v12, 0.0 }
 0x10a   :  { %v158_v18 = vmul.f32 %v264_v13, %v149_v14 }
 0x10b   :  { %v157_v16 = vmul.f32 %v264_v13, %v148_v15 }
 0x10c   :  { %v163_v19 = vsel %vm159_vm1, %v158_v18, 0.0 }
 0x10d   :  { %v160_v17 = vsel %vm159_vm1, %v157_v16, 0.0 }
 0x10e   :  { %161 = vadd.xlane.f32.xlu0 %v160_v17 }
 0x112   :  { %164 = vadd.xlane.f32.xlu0 %v163_v19 }
 0x19b   :  { %v162_v21 = vpop.xlane.xlu0 %161 }
 0x19c   :  { %v168_v22 = vadd.f32 %v167_v20, %v162_v21 }
 0x19e   :  { %v170_v23 = vrot.slane %v168_v22, 4 }
 0x19f   :  { %v165_v24 = vpop.xlane.xlu0 %164 }
 0x1a0   :  { %v171_v25 = vmax.f32 %v168_v22, %v170_v23  ;;  %v169_v26 = vadd.f32 %v167_v20, %v165_v24 }
 0x1a2   :  { %v172_v27 = vrot.slane %v171_v25, 2  ;;  %v176_v28 = vrot.slane %v169_v26, 4 }
 0x1a4   :  { %v173_v29 = vmax.f32 %v171_v25, %v172_v27  ;;  %v177_v30 = vmax.f32 %v169_v26, %v176_v28 }
 0x1a6   :  { %v174_v31 = vrot.slane %v173_v29, 1  ;;  %v178_v32 = vrot.slane %v177_v30, 2 }
 0x1a8   :  { %v175_v33 = vmax.f32 %v173_v29, %v174_v31  ;;  %v179_v34 = vmax.f32 %v177_v30, %v178_v32 }
 0x1aa   :  { %v182_v35 = vsub.f32 %v168_v22, %v175_v33  ;;  %v180_v36 = vrot.slane %v179_v34, 1 }
 0x1ac   :  { %v184_v37 = vmul.f32 1.442695, %v182_v35  ;;  %v181_v38 = vmax.f32 %v179_v34, %v180_v36 }
 0x1ae   :  { %298 = vpow2.f32 %v184_v37  ;;  %v183_v39 = vsub.f32 %v169_v26, %v181_v38 }
 0x1b0   :  { %v186_v40 = vmul.f32 1.442695, %v183_v39 }
 0x1b2   :  { %300 = vpow2.f32 %v186_v40 }
 0x1b8   :  { %v299_v41 = vpop.eup %298 }
 0x1b9   :  { %v188_v42 = vrot.slane %v299_v41, 4 }
 0x1bb   :  { %v189_v43 = vadd.f32 %v299_v41, %v188_v42 }
 0x1bc   :  { %v301_v44 = vpop.eup %300 }
 0x1bd   :  { %v190_v45 = vrot.slane %v189_v43, 2  ;;  %v194_v46 = vrot.slane %v301_v44, 4 }
 0x1bf   :  { %v191_v47 = vadd.f32 %v190_v45, %v189_v43  ;;  %v195_v48 = vadd.f32 %v301_v44, %v194_v46 }
 0x1c1   :  { %v192_v49 = vrot.slane %v191_v47, 1  ;;  %v196_v50 = vrot.slane %v195_v48, 2 }
 0x1c3   :  { %v193_v51 = vadd.f32 %v192_v49, %v191_v47  ;;  %v197_v52 = vadd.f32 %v196_v50, %v195_v48 }
 0x1c5   :  { %v198_v53 = vrot.slane %v197_v52, 1  ;;  %302 = vrcp.f32 %v193_v51 }
 0x1c7   :  { %v199_v55 = vadd.f32 %v198_v53, %v197_v52 }
 0x1c9   :  { %304 = vrcp.f32 %v199_v55 }
 0x1cf   :  { %v303_v59 = vpop.eup %302 }
 0x1d0   :  { %v201_v60 = vmul.f32 %v303_v59, %v299_v41 }
 0x1d2   :  { %v204_v61 = vmul.f32 %v201_v60, %v475_v5  ;;  %v217_v62 = vrot.slane %v201_v60, %v216_v58 }
 0x1d3   :  { %v305_v63 = vpop.eup %304 }
 0x1d4   :  { %v203_v0 = vmul.f32 %v305_v63, %v301_v44  ;;  %206 = vst.msk [vmem:[#allocation8] sm:$0xff] %vm66_vm0, %v204_v61 }
 0x1d5   :  { %225 = vst.msk [vmem:[#allocation9] sm:$0x1] %vm224_vm2, %v217_v62 }
 0x1d6   :  { %v205_v1 = vmul.f32 %v203_v0, %v479_v7  ;;  %v221_v2 = vrot.slane %v203_v0, %v216_v58 }
 0x1d8   :  { %207 = vst.msk [vmem:[#allocation8 + $0x8] sm:$0xff] %vm66_vm0, %v205_v1 }
 0x1d9   :  { %226 = vst.msk [vmem:[#allocation9 + $0x1] sm:$0x1] %vm224_vm2, %v221_v2 }
 0x1da   :  { %361 = shalt.err (!%p358_p6)
}
 0x1db   :  { %s362_s9 = scalar_lea.hbm %s537_s5, 256 }
 0x1dc   :  { %p363_p7 = scmp.ne.s32.totalorder %s537_s5, %s362_s9  ;;  %p366_p8 = scmp.lt.u32.totalorder %s362_s9, %s537_s5 }
 0x1de   :  { %p368_p9 = pnand %p366_p8, %p363_p7 }
 0x1e0   :  { %371 = shalt.err (!%p368_p9)
}
 0x1e1   :  { %238 = dma.vmem_to_hbm [thread:$0]  %s233_s3, 256, %s537_s5, [#allocation5], %s403_s7, %s403_s7, %s404_s8  }
 0x1e2   :  { %s372_s16 = scalar_lea.vmem %s496_s27, 32  ;;  %p377_p11 = scmp.lt.s32.totalorder %s496_s27, %s496_s27 }
 0x1e3   :  { %p373_p10 = scmp.ne.s32.totalorder %s496_s27, %s372_s16  ;;  %p378_p12 = scmp.lt.s32.totalorder %s372_s16, %s372_s16 }
 0x1e5   :  { %p379_p13 = por %p378_p12, %p377_p11 }
 0x1e7   :  { %p380_p0 = pnand %p379_p13, %p373_p10 }
 0x1e9   :  { %383 = shalt.err (!%p380_p0)
}
 0x1ea   :  { %s384_s19 = scalar_lea.hbm %s538_s6, 32 }
 0x1eb   :  { %p385_p1 = scmp.ne.s32.totalorder %s538_s6, %s384_s19  ;;  %p388_p2 = scmp.lt.u32.totalorder %s384_s19, %s538_s6 }
 0x1ed   :  { %p390_p3 = pnand %p388_p2, %p385_p1 }
 0x1ef   :  { %393 = shalt.err (!%p390_p3)
}
 0x1f0   :  { %s408_s5 = smov 16   ;;  %s409_s7 = smov 1  }
 0x1f1   :  { %250 = dma.vmem_to_hbm [thread:$0]  %s496_s27, 32, %s538_s6, [#allocation10], %s408_s5, %s408_s5, %s409_s7  }
 0x1f2   :  { %398 = dma.done.wait [#allocation5], 256  }
 0x1f3   :  { %399 = vsyncadd [#allocation5], 4294967040 }
 0x1f4   :  { %400 = dma.done.wait [#allocation10], 32  }
 0x1f5   :  { %401 = vsyncadd [#allocation10], 4294967264 }
 0x1f6   :  { %257 = vsyncpa [#allocation4], 1 }
 0x1f7   :  { %258 = vsyncpa [#allocation7], 1 }
 0x1f8   :  { %259 = vsyncpa [#allocation5], 1 }
 0x1f9   :  { %260 = vsyncpa [#allocation10], 1 }

</bundles_post_ra>
